<compile_context>
chip_gen: v7x
topology: tpu7x:2x2x1
jax: 0.10.0
libtpu: 0.0.40
codegen_flags: <defaults>
</compile_context>

<pallas_src>
import jax
import jax.numpy as jnp
from jax.experimental import pallas as pl
from jax.experimental.pallas import tpu as pltpu

_LANE = 128
_VMEM_BUDGET = 12 * 1024 * 1024   # target for the double-buffered working set
_VMEM_LIMIT = 32 * 1024 * 1024    # explicit scoped-VMEM limit (safe v5e..v7x)
_MAX_N_TILE = 2048
_MAX_B_TILE = 8


def _round_up(x, m):
    return -(-x // m) * m


def _pick_lane_tile(n_fold, lane_col_bytes, fixed_bytes):
    """Pick a lane tile (multiple of 128) so the pipeline working set fits."""
    n_min = _round_up(max(n_fold, 1), _LANE)
    avail = max(_VMEM_BUDGET - fixed_bytes, lane_col_bytes * _LANE)
    tile = max(_LANE, (avail // lane_col_bytes) // _LANE * _LANE)
    tile = min(tile, _MAX_N_TILE, n_min)
    n_pad = _round_up(n_fold, tile)
    return tile, n_pad


def _dnconv_shared_kernel(a_ref, x_ref, o_ref):
    # a_ref: (V, W)        shared adjacency, VMEM-resident across all steps
    # x_ref: (W, n_tile)   lane tile of the folded input
    # o_ref: (V, n_tile)
    o_ref[...] = jnp.dot(
        a_ref[...], x_ref[...], preferred_element_type=jnp.float32
    ).astype(o_ref.dtype)


def _dnconv_batched_kernel(a_ref, x_ref, o_ref):
    # a_ref: (b_tile, V, W), x_ref: (b_tile, W, n_tile), o_ref: (b_tile, V, n_tile)
    o_ref[...] = jnp.einsum(
        "bvw,bwn->bvn", a_ref[...], x_ref[...],
        preferred_element_type=jnp.float32,
    ).astype(o_ref.dtype)


def dnconv(x, A, compute_dtype=None):
    """out[n, c, v, l] = sum_w A[n, v, w] * x[n, c, w, l]  (A may be 2-D, shared)."""
    if compute_dtype is not None:
        x = x.astype(compute_dtype)
        A = A.astype(compute_dtype)
    dtype = x.dtype
    itemsize = jnp.dtype(dtype).itemsize
    B, C, W, L = x.shape

    if A.ndim == 2:
        # ---- shared adjacency: one matmul, B folded into the lane axis ----
        V, Wa = A.shape
        assert Wa == W, "adjacency inner dim must match node dim of x"
        n_fold = B * C * L
        lane_col_bytes = 2 * (W + V) * itemsize        # dbl-buffered x + out tiles
        fixed_bytes = 2 * V * W * itemsize             # resident adjacency
        n_tile, n_pad = _pick_lane_tile(n_fold, lane_col_bytes, fixed_bytes)

        # Fold batch + channels into lanes: (B,C,W,L) -> (W, B*C*L); pad lanes
        # up to a multiple of the tile so every store is lane-dense.
        x2 = jnp.transpose(x, (2, 0, 1, 3)).reshape(W, n_fold)
        if n_pad != n_fold:
            x2 = jnp.pad(x2, ((0, 0), (0, n_pad - n_fold)))

        y = pl.pallas_call(
            _dnconv_shared_kernel,
            out_shape=jax.ShapeDtypeStruct((V, n_pad), dtype),
            grid=(n_pad // n_tile,),
            in_specs=[
                pl.BlockSpec((V, W), lambda j: (0, 0)),        # stays resident
                pl.BlockSpec((W, n_tile), lambda j: (0, j)),
            ],
            out_specs=pl.BlockSpec((V, n_tile), lambda j: (0, j)),
            compiler_params=pltpu.CompilerParams(
                dimension_semantics=("parallel",),
                vmem_limit_bytes=_VMEM_LIMIT,
            ),
        )(A, x2)

        return jnp.transpose(y[:, :n_fold].reshape(V, B, C, L), (1, 2, 0, 3))

    # ---- batched adjacency: b_tile batches per grid step, lane-tiled ----
    assert A.ndim == 3 and A.shape[0] == B, "A must be (V,W) or (B,V,W)"
    V = A.shape[1]
    assert A.shape[2] == W, "adjacency inner dim must match node dim of x"
    n_fold = C * L

    # Batches per grid step: largest divisor of B (<= cap) whose fixed VMEM
    # footprint still leaves room for at least one 128-wide lane tile.
    b_tile = 1
    for d in range(min(_MAX_B_TILE, B), 0, -1):
        if B % d == 0 and 2 * d * (V * W + (W + V) * _LANE) * itemsize <= _VMEM_BUDGET:
            b_tile = d
            break

    lane_col_bytes = 2 * b_tile * (W + V) * itemsize
    fixed_bytes = 2 * b_tile * V * W * itemsize
    n_tile, n_pad = _pick_lane_tile(n_fold, lane_col_bytes, fixed_bytes)

    xt = jnp.transpose(x, (0, 2, 1, 3)).reshape(B, W, n_fold)
    if n_pad != n_fold:
        xt = jnp.pad(xt, ((0, 0), (0, 0), (0, n_pad - n_fold)))

    y = pl.pallas_call(
        _dnconv_batched_kernel,
        out_shape=jax.ShapeDtypeStruct((B, V, n_pad), dtype),
        grid=(B // b_tile, n_pad // n_tile),
        in_specs=[
            pl.BlockSpec((b_tile, V, W), lambda i, j: (i, 0, 0)),   # resident over j
            pl.BlockSpec((b_tile, W, n_tile), lambda i, j: (i, 0, j)),
        ],
        out_specs=pl.BlockSpec((b_tile, V, n_tile), lambda i, j: (i, 0, j)),
        compiler_params=pltpu.CompilerParams(
            dimension_semantics=("parallel", "parallel"),
            vmem_limit_bytes=_VMEM_LIMIT,
        ),
    )(A, xt)

    return jnp.transpose(y[..., :n_fold].reshape(B, V, C, L), (0, 2, 1, 3))


if __name__ == "__main__":
    key = jax.random.PRNGKey(0)
    kx, ka = jax.random.split(key, 2)

    B, C, V, L = 2, 4, 16, 16
    x = jax.random.normal(kx, (B, C, V, L), dtype=jnp.float32)
    # Row-stochastic adjacency (the module broadcasts a 2-D A over batch).
    adj2d = jax.nn.softmax(jax.random.normal(ka, (V, V), dtype=jnp.float32), axis=-1)

    # --- 2-D shared adjacency (unsqueeze/repeat branch) ---
    out2 = dnconv(x, adj2d)
    jax.block_until_ready(out2)
    ref2 = jnp.einsum("ncwl,vw->ncvl", x, adj2d)
    assert out2.shape == (B, C, V, L)
    assert jnp.allclose(out2, ref2, rtol=1e-4, atol=1e-4)

    # --- batched 3-D adjacency ---
    adj3d = jnp.stack([adj2d, adj2d.T], axis=0)          # (B, V, V)
    out3 = dnconv(x, adj3d)
    jax.block_until_ready(out3)
    ref3 = jnp.einsum("ncwl,nvw->ncvl", x, adj3d)
    assert out3.shape == (B, C, V, L)
    assert jnp.allclose(out3, ref3, rtol=1e-4, atol=1e-4)

    # --- bf16 data-carry (memory-bound op -> halves HBM bytes); looser tol ---
    out2_bf = dnconv(x, adj2d, compute_dtype=jnp.bfloat16)
    jax.block_until_ready(out2_bf)
    assert jnp.allclose(out2_bf.astype(jnp.float32), ref2, rtol=3e-2, atol=3e-2)

    out3_bf = dnconv(x, adj3d, compute_dtype=jnp.bfloat16)
    jax.block_until_ready(out3_bf)
    assert jnp.allclose(out3_bf.astype(jnp.float32), ref3, rtol=3e-2, atol=3e-2)

    print("KERNEL_OK")
</pallas_src>

<mosaic_0001>
module attributes {stable_mosaic.version = 11 : i64} {
  func.func @_dnconv_shared_kernel(%arg0: i32, %arg1: memref<16x16xf32, #tpu.memory_space<vmem>>, %arg2: memref<16x128xf32, #tpu.memory_space<vmem>>, %arg3: memref<16x128xf32, #tpu.memory_space<vmem>>) attributes {dimension_semantics = [#tpu.dimension_semantics<parallel>], iteration_bounds = array<i64: 1>, scalar_prefetch = 0 : i64, scratch_operands = 0 : i64, tpu.core_type = #tpu.core_type<tc>, window_params = [{pipeline_mode = #tpu.pipeline_mode<synchronous>, transform_indices = @transform_0, window_bounds = array<i64: 16, 16>}, {transform_indices = @transform_1, window_bounds = array<i64: 16, 128>}, {transform_indices = @transform_2, window_bounds = array<i64: 16, 128>}]} {
    %c0 = arith.constant 0 : index
    %c0_0 = arith.constant 0 : index
    %0 = vector.load %arg1[%c0, %c0_0] : memref<16x16xf32, #tpu.memory_space<vmem>>, vector<16x16xf32>
    %c0_1 = arith.constant 0 : index
    %c0_2 = arith.constant 0 : index
    %1 = vector.load %arg2[%c0_1, %c0_2] : memref<16x128xf32, #tpu.memory_space<vmem>>, vector<16x128xf32>
    %cst = arith.constant dense<0.000000e+00> : vector<16x128xf32>
    %2 = tpu.matmul %0, %1, %cst {dimension_numbers = #tpu.dot_dimension_numbers<[1], [0], [0], [1], [0, 0, 1, 1], [], []>} : vector<16x16xf32>, vector<16x128xf32>, vector<16x128xf32> -> vector<16x128xf32>
    %c0_3 = arith.constant 0 : index
    %c0_4 = arith.constant 0 : index
    %3 = vector.load %arg3[%c0_3, %c0_4] : memref<16x128xf32, #tpu.memory_space<vmem>>, vector<16x128xf32>
    tpu.vector_store %arg3[%c0_3, %c0_4], %2 {strides = array<i32>} : memref<16x128xf32, #tpu.memory_space<vmem>>, vector<16x128xf32>,
    return
  }
  func.func @transform_0(%arg0: i32) -> (i32, i32) {
    %c0_i32 = arith.constant 0 : i32
    %c0_i32_0 = arith.constant 0 : i32
    %c0_i32_1 = arith.constant 0 : i32
    return %c0_i32, %c0_i32_0 : i32, i32
  }
  func.func @transform_1(%arg0: i32) -> (i32, i32) {
    %c0_i32 = arith.constant 0 : i32
    %c0_i32_0 = arith.constant 0 : i32
    return %c0_i32, %arg0 : i32, i32
  }
  func.func @transform_2(%arg0: i32) -> (i32, i32) {
    %c0_i32 = arith.constant 0 : i32
    %c0_i32_0 = arith.constant 0 : i32
    return %c0_i32, %arg0 : i32, i32
  }
}

</mosaic_0001>

<bundles_post_ra>
// kernel: tpu_custom_call.1
= control target key start
LH: loop header
LB: loop body
LE: loop exit
PB: predicated region body
PF: predicated region fallthrough
CT: control target
= control target key end

     0   :  { %7 = vsyncpa [#allocation3], 0  ;;  %s305_s0 = inlined_call_operand.hbm [shape: f32[16,16], index: 0, kind: input, shape index: {}]   ;;  %s306_s1 = inlined_call_operand.hbm [shape: f32[16,128], index: 1, kind: input, shape index: {}]   ;;  %s307_s2 = inlined_call_operand.hbm [shape: f32[16,128], index: 2, kind: output, shape index: {}]  }
   0x1   :  { %8 = vsyncpa [#allocation6], 0 }
   0x2   :  { %9 = vsyncpa [#allocation4], 0  ;;  %s240_s9 = smov [#allocation2]   ;;  %s168_s13 = scalar_lea.hbm %s305_s0, 256 }
   0x3   :  { %s15_s10 = sshll.u32 %s240_s9, 4  ;;  %p169_p0 = scmp.ne.s32.totalorder %s305_s0, %s168_s13  ;;  %s16_s10 = int_to_ptr.vmem [resolvable:$true] %s15_s10 }
   0x4   :  { %p172_p1 = scmp.lt.u32.totalorder %s168_s13, %s305_s0 }
   0x6   :  { %p174_p2 = pnand %p172_p1, %p169_p0 }
   0x8   :  { %177 = shalt.err (!%p174_p2)
}
   0x9   :  { %s178_s18 = scalar_lea.vmem %s16_s10, 256  ;;  %p183_p4 = scmp.lt.s32.totalorder %s16_s10, %s16_s10 }
   0xa   :  { %p179_p3 = scmp.ne.s32.totalorder %s16_s10, %s178_s18  ;;  %p184_p5 = scmp.lt.s32.totalorder %s178_s18, %s178_s18 }
   0xc   :  { %p185_p6 = por %p184_p5, %p183_p4 }
   0xe   :  { %p186_p7 = pnand %p185_p6, %p179_p3 }
  0x10   :  { %189 = shalt.err (!%p186_p7)
}
  0x11   :  { %s241_s19 = smov 128   ;;  %s242_s20 = smov 8  }
  0x12   :  { %21 = dma.hbm_to_vmem [thread:$0]  %s305_s0, 256, %s16_s10, [#allocation3], %s241_s19, %s241_s19, %s242_s20  }
  0x13   :  { %s243_s23 = smov [#allocation5]   ;;  %s190_s27 = scalar_lea.hbm %s306_s1, 256 }
  0x14   :  { %s27_s24 = sshll.u32 %s243_s23, 4  ;;  %p191_p8 = scmp.ne.s32.totalorder %s306_s1, %s190_s27  ;;  %s28_s24 = int_to_ptr.vmem [resolvable:$true] %s27_s24 }
  0x15   :  { %p194_p9 = scmp.lt.u32.totalorder %s190_s27, %s306_s1 }
  0x17   :  { %p196_p10 = pnand %p194_p9, %p191_p8 }
  0x19   :  { %199 = shalt.err (!%p196_p10)
}
  0x1a   :  { %s200_s4 = scalar_lea.vmem %s28_s24, 256  ;;  %p205_p12 = scmp.lt.s32.totalorder %s28_s24, %s28_s24 }
  0x1b   :  { %p201_p11 = scmp.ne.s32.totalorder %s28_s24, %s200_s4  ;;  %p206_p13 = scmp.lt.s32.totalorder %s200_s4, %s200_s4 }
  0x1d   :  { %p207_p0 = por %p206_p13, %p205_p12 }
  0x1f   :  { %p208_p1 = pnand %p207_p0, %p201_p11 }
  0x21   :  { %211 = shalt.err (!%p208_p1)
}
  0x22   :  { %33 = dma.hbm_to_vmem [thread:$0]  %s306_s1, 256, %s28_s24, [#allocation6], %s241_s19, %s241_s19, %s242_s20  }
  0x23   :  { %234 = dma.done.wait [#allocation3], 256  }
  0x24   :  { %235 = vsyncadd [#allocation3], 4294967040 }
  0x25   :  { %236 = dma.done.wait [#allocation6], 256  }
  0x26   :  { %237 = vsyncadd [#allocation6], 4294967040  ;;  %vm44_vm0 = vcmask 130048   ;;  %v42_v0 = vld [vmem:[#allocation5] sm:$0xff]  ;;  %v43_v1 = vld [vmem:[#allocation5 + $0x8] sm:$0xff]  ;;  %s244_s6 = smov [#allocation7]  }
  0x27   :  { %v40_v2 = vld [vmem:[#allocation2] sm:$0xff]  ;;  %v159_v3 = vpack.c.bf16 %v43_v1, %v42_v0  ;;  %v41_v4 = vld [vmem:[#allocation2 + $0x8] sm:$0xff]  ;;  %s133_s7 = sshll.u32 %s244_s6, 4  ;;  %s134_s7 = int_to_ptr.vmem [resolvable:$true] %s133_s7 }
  0x28   :  { %156 = vmatprep.mubr.msk.f32.mxu0 %vm44_vm0, %v40_v2  ;;  %s212_s1 = scalar_lea.vmem %s134_s7, 256  ;;  %p217_p3 = scmp.lt.s32.totalorder %s134_s7, %s134_s7 }
  0x29   :  { %160 = vmatprep.subr.bf16.mxu0 %v159_v3  ;;  %p213_p2 = scmp.ne.s32.totalorder %s134_s7, %s212_s1  ;;  %p218_p4 = scmp.lt.s32.totalorder %s212_s1, %s212_s1 }
  0x2a   :  { %162 = vmatpush3.bf16.msra.mxu0 %v159_v3 }
  0x2b   :  { %p219_p5 = por %p218_p4, %p217_p3 }
  0x2d   :  { %157 = vmatmul.mubr.msk.f32.vlgmr.msra.gmra.mrb[0].mxu0 %vm44_vm0, %v41_v4  ;;  %p220_p6 = pnand %p219_p5, %p213_p2 }
 0x100   :  { %v158_v5 = vpop.f32.mrb[0].mxu0 }
 0x101   :  { %127 = vst [vmem:[#allocation7 + $0x8] sm:$0xff] %v158_v5  ;;  %v117_v6 = vpop.f32.mrb[1].mxu0 }
 0x102   :  { %126 = vst [vmem:[#allocation7] sm:$0xff] %v117_v6 }
 0x103   :  { %223 = shalt.err (!%p220_p6)
}
 0x104   :  { %s224_s10 = scalar_lea.hbm %s307_s2, 256 }
 0x105   :  { %p225_p7 = scmp.ne.s32.totalorder %s307_s2, %s224_s10  ;;  %p228_p8 = scmp.lt.u32.totalorder %s224_s10, %s307_s2 }
 0x107   :  { %p230_p9 = pnand %p228_p8, %p225_p7 }
 0x109   :  { %233 = shalt.err (!%p230_p9)
}
 0x10a   :  { %139 = dma.vmem_to_hbm [thread:$0]  %s134_s7, 256, %s307_s2, [#allocation4], %s241_s19, %s241_s19, %s242_s20  }
 0x10b   :  { %238 = dma.done.wait [#allocation4], 256  }
 0x10c   :  { %239 = vsyncadd [#allocation4], 4294967040 }
 0x10d   :  { %143 = vsyncpa [#allocation3], 1 }
 0x10e   :  { %144 = vsyncpa [#allocation6], 1 }
 0x10f   :  { %145 = vsyncpa [#allocation4], 1 }

</bundles_post_ra>
